<compile_context>
chip_gen: v7x
topology: tpu7x:2x2x1
jax: 0.10.0
libtpu: 0.0.40
codegen_flags: <defaults>
</compile_context>

<pallas_src>
import functools

import jax
import jax.numpy as jnp
from jax.experimental import pallas as pl
from jax.experimental.pallas import tpu as pltpu


def _round_up(x, m):
    return ((x + m - 1) // m) * m


def _cdiv(a, b):
    return (a + b - 1) // b


def _single_buffered_spec(block_shape, index_map):
    """BlockSpec for a block whose index never changes: one pipeline buffer."""
    try:
        return pl.BlockSpec(block_shape, index_map, pipeline_mode=pl.Buffered(1))
    except Exception:  # older jax without pipeline_mode / Buffered
        return pl.BlockSpec(block_shape, index_map)


def _gelu_f32(h, approximate):
    if approximate:
        # tanh-GELU runs on the EUP (free slot under MXU work) but differs
        # slightly from torch.nn.GELU()'s default erf numerics.
        c = jnp.float32(0.7978845608028654)  # sqrt(2/pi)
        return 0.5 * h * (1.0 + jnp.tanh(c * (h + 0.044715 * h * h * h)))
    # Exact erf-based GELU == torch.nn.GELU() default.
    return 0.5 * h * (1.0 + jax.lax.erf(h * jnp.float32(0.7071067811865476)))


def _mlp_fused_kernel(x_ref, w1_ref, b1_ref, w2_ref, b2_ref, o_ref, *,
                      approximate_gelu):
    # Whole w2 resident in VMEM: one pass per row tile, no scratch.
    h = jnp.dot(x_ref[...], w1_ref[...], preferred_element_type=jnp.float32)
    h = h + b1_ref[...].astype(jnp.float32)
    h = _gelu_f32(h, approximate_gelu)
    y = jnp.dot(h.astype(w2_ref.dtype), w2_ref[...],
                preferred_element_type=jnp.float32)
    y = y + b2_ref[...].astype(jnp.float32)
    o_ref[...] = y.astype(o_ref.dtype)


def _mlp_tiled_kernel(x_ref, w1_ref, b1_ref, w2_ref, b2_ref, o_ref, h_ref, *,
                      approximate_gelu):
    # w2 streamed in (hidden, tn) tiles; h cached per row tile in scratch
    # (compute dtype, written once under j == 0, reused for every column tile).
    j = pl.program_id(1)

    @pl.when(j == 0)
    def _():
        h = jnp.dot(x_ref[...], w1_ref[...], preferred_element_type=jnp.float32)
        h = h + b1_ref[...].astype(jnp.float32)
        h_ref[...] = _gelu_f32(h, approximate_gelu).astype(h_ref.dtype)

    y = jnp.dot(h_ref[...], w2_ref[...], preferred_element_type=jnp.float32)
    y = y + b2_ref[...].astype(jnp.float32)
    o_ref[...] = y.astype(o_ref.dtype)


def _estimate_vmem_bytes(tm, tn, n_n, mm_hidden, hidden, c_bytes, o_bytes):
    """Rough VMEM working-set estimate for the chosen tiling."""
    est = mm_hidden * hidden * c_bytes          # w1 (single pipeline buffer)
    est += 2 * tm * mm_hidden * c_bytes         # x tiles (double buffered)
    est += 2 * tm * tn * o_bytes                # out tiles (double buffered)
    est += tm * hidden * 4                      # f32 intermediate of matmul 1
    if n_n == 1:
        est += hidden * hidden * c_bytes        # resident w2 (single buffer)
        est += tm * hidden * c_bytes            # GELU output before matmul 2
    else:
        est += 2 * hidden * tn * c_bytes        # streamed w2 tiles
        est += tm * hidden * c_bytes            # cached h scratch
    est += 8 * hidden * 4                       # biases + slack
    return est


def mlp_pallas(x, w1, b1, w2, b2, *, tm=512, tn=None,
               compute_dtype=jnp.bfloat16, approximate_gelu=False,
               vmem_limit_bytes=None):
    """Linear(mm_hidden->hidden) -> GELU -> Linear(hidden->hidden).

    x: (..., mm_hidden).  Weights are stored as (in_features, out_features),
    i.e. y = x @ W + b (same math as nn.Linear applied with W^T).
    Default compute dtype is bf16 (f32 accumulation); pass
    compute_dtype=jnp.float32 to reproduce the f32 torch module closely.
    """
    orig_shape = x.shape
    mm_hidden = orig_shape[-1]
    hidden = w1.shape[1]
    assert w1.shape[0] == mm_hidden and w2.shape == (hidden, hidden)
    out_dtype = x.dtype

    cdt = jnp.dtype(compute_dtype) if compute_dtype is not None else jnp.dtype(x.dtype)
    if jnp.dtype(x.dtype) != cdt:
        x = x.astype(cdt)
    if jnp.dtype(w1.dtype) != cdt:
        w1 = w1.astype(cdt)
    if jnp.dtype(w2.dtype) != cdt:
        w2 = w2.astype(cdt)
    c_bytes = cdt.itemsize
    o_bytes = jnp.dtype(out_dtype).itemsize

    x2 = x.reshape(-1, mm_hidden)
    M = x2.shape[0]

    # --- Row tiling: balanced tiles, >= 2 tiles when there's enough work so
    # the "parallel" axis actually feeds both v7x TensorCores. ---------------
    tm_req = _round_up(max(int(tm), 8), 8)
    n_m = max(1, _cdiv(M, tm_req))
    if n_m == 1 and M > 16:
        n_m = 2
    tm = min(tm_req, _round_up(_cdiv(M, n_m), 8))
    m_pad = n_m * tm
    if m_pad != M:
        # Pads by < one row tile; only taken when M isn't a tile multiple.
        x2 = jnp.pad(x2, ((0, m_pad - M), (0, 0)))

    # --- VMEM budget (chip-aware) and w2 tiling choice. ---------------------
    try:
        vmem_cap = int(pltpu.get_tpu_info().vmem_capacity_bytes)
    except Exception:
        vmem_cap = 64 * 1024 * 1024  # conservative: v7x per-TC VMEM
    fit_budget = (vmem_cap * 3) // 4  # leave headroom for compiler scratch

    if tn is None:
        candidates = [hidden] + [c for c in (1024, 512, 256, 128)
                                 if c < hidden and hidden % c == 0]
        tn = candidates[-1]
        for c in candidates:  # prefer resident w2, then the largest tile
            if _estimate_vmem_bytes(tm, c, hidden // c, mm_hidden, hidden,
                                    c_bytes, o_bytes) <= fit_budget:
                tn = c
                break
    else:
        assert hidden % tn == 0, "tn must divide hidden"
    n_n = hidden // tn

    est = _estimate_vmem_bytes(tm, tn, n_n, mm_hidden, hidden, c_bytes, o_bytes)
    if vmem_limit_bytes is None:
        vmem_limit_bytes = min(max(est + (8 << 20), 32 << 20),
                               (vmem_cap * 7) // 8)

    b1_2d = b1.reshape(1, hidden)
    b2_2d = b2.reshape(1, hidden)

    if n_n == 1:
        # Fused path: w2 fully resident (v5e / v6e at production sizes).
        kernel = functools.partial(_mlp_fused_kernel,
                                   approximate_gelu=approximate_gelu)
        grid = (n_m,)
        in_specs = [
            pl.BlockSpec((tm, mm_hidden), lambda i: (i, 0)),
            _single_buffered_spec((mm_hidden, hidden), lambda i: (0, 0)),
            _single_buffered_spec((1, hidden), lambda i: (0, 0)),
            _single_buffered_spec((hidden, hidden), lambda i: (0, 0)),
            _single_buffered_spec((1, hidden), lambda i: (0, 0)),
        ]
        out_specs = pl.BlockSpec((tm, hidden), lambda i: (i, 0))
        scratch_shapes = []
        dim_sem = ("parallel",)
    else:
        # Column-tiled path: w2 streamed, h cached in compute-dtype scratch
        # (v7x's 64 MiB VMEM at production hidden sizes).
        kernel = functools.partial(_mlp_tiled_kernel,
                                   approximate_gelu=approximate_gelu)
        grid = (n_m, n_n)
        in_specs = [
            pl.BlockSpec((tm, mm_hidden), lambda i, j: (i, 0)),
            _single_buffered_spec((mm_hidden, hidden), lambda i, j: (0, 0)),
            _single_buffered_spec((1, hidden), lambda i, j: (0, 0)),
            pl.BlockSpec((hidden, tn), lambda i, j: (0, j)),
            pl.BlockSpec((1, tn), lambda i, j: (0, j)),
        ]
        out_specs = pl.BlockSpec((tm, tn), lambda i, j: (i, j))
        scratch_shapes = [pltpu.VMEM((tm, hidden), cdt)]
        dim_sem = ("parallel", "arbitrary")

    out = pl.pallas_call(
        kernel,
        out_shape=jax.ShapeDtypeStruct((m_pad, hidden), out_dtype),
        grid_spec=pltpu.PrefetchScalarGridSpec(
            num_scalar_prefetch=0,
            grid=grid,
            in_specs=in_specs,
            out_specs=out_specs,
            scratch_shapes=scratch_shapes,
        ),
        compiler_params=pltpu.CompilerParams(
            dimension_semantics=dim_sem,
            vmem_limit_bytes=int(vmem_limit_bytes),
        ),
    )(x2, w1, b1_2d, w2, b2_2d)

    if m_pad != M:
        out = out[:M]
    return out.reshape(*orig_shape[:-1], hidden)


def _reference(x, w1, b1, w2, b2):
    h = x @ w1 + b1
    h = jax.nn.gelu(h, approximate=False)
    return h @ w2 + b2


if __name__ == "__main__":
    # Small shapes consistent with the module: batch=2, seq=8 tokens,
    # mm_hidden_size=32, hidden_size=32.
    B, S = 2, 8
    mm_hidden_size, hidden_size = 32, 32

    key = jax.random.PRNGKey(0)
    kx, k1, kb1, k2, kb2 = jax.random.split(key, 5)

    x = jax.random.normal(kx, (B, S, mm_hidden_size), dtype=jnp.float32)
    # nn.Linear stores W as (out, in); we keep (in, out) so the kernel does
    # x @ W -- semantically identical.
    w1 = jax.random.normal(k1, (mm_hidden_size, hidden_size), jnp.float32) * 0.05
    b1 = jax.random.normal(kb1, (hidden_size,), jnp.float32) * 0.05
    w2 = jax.random.normal(k2, (hidden_size, hidden_size), jnp.float32) * 0.05
    b2 = jax.random.normal(kb2, (hidden_size,), jnp.float32) * 0.05

    ref = _reference(x, w1, b1, w2, b2)

    # 1) Default path: bf16 compute (f32 accumulation), fused / resident w2.
    #    bf16 weights/activations => compare with a bf16-appropriate tolerance.
    out = jax.block_until_ready(mlp_pallas(x, w1, b1, w2, b2))
    assert out.shape == (B, S, hidden_size)
    assert out.dtype == x.dtype
    assert jnp.allclose(out, ref, atol=2e-2, rtol=2e-2), "bf16 default mismatch"

    # 2) Full f32 compute path (closest to the f32 torch module).
    out_f32 = jax.block_until_ready(
        mlp_pallas(x, w1, b1, w2, b2, compute_dtype=jnp.float32))
    assert jnp.allclose(out_f32, ref, atol=5e-3, rtol=5e-3), "f32 mismatch"

    # 3) Ragged token count (padding path) + tiny forced row tile.
    x_odd = jax.random.normal(kx, (3, 5, mm_hidden_size), dtype=jnp.float32)
    ref_odd = _reference(x_odd, w1, b1, w2, b2)
    out_odd = jax.block_until_ready(mlp_pallas(x_odd, w1, b1, w2, b2, tm=8))
    assert out_odd.shape == (3, 5, hidden_size)
    assert jnp.allclose(out_odd, ref_odd, atol=2e-2, rtol=2e-2), "padded mismatch"

    # 4) Column-tiled path (n_n > 1, scratch-cached h) at a small size.
    mm2, hid2 = 64, 256
    kx2, k12, kb12, k22, kb22 = jax.random.split(jax.random.PRNGKey(1), 5)
    xt = jax.random.normal(kx2, (2, 8, mm2), jnp.float32)
    w1t = jax.random.normal(k12, (mm2, hid2), jnp.float32) * 0.05
    b1t = jax.random.normal(kb12, (hid2,), jnp.float32) * 0.05
    w2t = jax.random.normal(k22, (hid2, hid2), jnp.float32) * 0.05
    b2t = jax.random.normal(kb22, (hid2,), jnp.float32) * 0.05
    ref_t = _reference(xt, w1t, b1t, w2t, b2t)
    out_t = jax.block_until_ready(mlp_pallas(xt, w1t, b1t, w2t, b2t, tn=128))
    assert out_t.shape == (2, 8, hid2)
    assert jnp.allclose(out_t, ref_t, atol=2e-2, rtol=2e-2), "tiled-path mismatch"

    print("KERNEL_OK")
</pallas_src>

<mosaic_0001>
module attributes {stable_mosaic.version = 11 : i64} {
  func.func @_mlp_fused_kernel(%arg0: i32, %arg1: memref<16x32xbf16, #tpu.memory_space<vmem>>, %arg2: memref<32x32xbf16, #tpu.memory_space<vmem>>, %arg3: memref<1x32xf32, #tpu.memory_space<vmem>>, %arg4: memref<32x32xbf16, #tpu.memory_space<vmem>>, %arg5: memref<1x32xf32, #tpu.memory_space<vmem>>, %arg6: memref<16x32xf32, #tpu.memory_space<vmem>>) attributes {dimension_semantics = [#tpu.dimension_semantics<parallel>], iteration_bounds = array<i64: 1>, scalar_prefetch = 0 : i64, scratch_operands = 0 : i64, tpu.core_type = #tpu.core_type<tc>, window_params = [{transform_indices = @transform_0, window_bounds = array<i64: 16, 32>}, {pipeline_mode = #tpu.pipeline_mode<synchronous>, transform_indices = @transform_1, window_bounds = array<i64: 32, 32>}, {pipeline_mode = #tpu.pipeline_mode<synchronous>, transform_indices = @transform_2, window_bounds = array<i64: 1, 32>}, {pipeline_mode = #tpu.pipeline_mode<synchronous>, transform_indices = @transform_3, window_bounds = array<i64: 32, 32>}, {pipeline_mode = #tpu.pipeline_mode<synchronous>, transform_indices = @transform_4, window_bounds = array<i64: 1, 32>}, {transform_indices = @transform_5, window_bounds = array<i64: 16, 32>}]} {
    %c0 = arith.constant 0 : index
    %c0_0 = arith.constant 0 : index
    %0 = vector.load %arg1[%c0, %c0_0] : memref<16x32xbf16, #tpu.memory_space<vmem>>, vector<16x32xbf16>
    %c0_1 = arith.constant 0 : index
    %c0_2 = arith.constant 0 : index
    %1 = vector.load %arg2[%c0_1, %c0_2] : memref<32x32xbf16, #tpu.memory_space<vmem>>, vector<32x32xbf16>
    %cst = arith.constant dense<0.000000e+00> : vector<16x32xf32>
    %2 = tpu.matmul %0, %1, %cst {dimension_numbers = #tpu.dot_dimension_numbers<[1], [0], [0], [1], [0, 0, 1, 1], [], []>} : vector<16x32xbf16>, vector<32x32xbf16>, vector<16x32xf32> -> vector<16x32xf32>
    %c0_3 = arith.constant 0 : index
    %c0_4 = arith.constant 0 : index
    %3 = vector.load %arg3[%c0_3, %c0_4] : memref<1x32xf32, #tpu.memory_space<vmem>>, vector<1x32xf32>
    %4 = vector.broadcast %3 : vector<1x32xf32> to vector<16x32xf32>
    %5 = arith.addf %2, %4 : vector<16x32xf32>
    %cst_5 = arith.constant 5.000000e-01 : f32
    %6 = vector.broadcast %cst_5 : f32 to vector<16x32xf32>
    %7 = arith.mulf %6, %5 : vector<16x32xf32>
    %cst_6 = arith.constant 0.707106769 : f32
    %8 = vector.broadcast %cst_6 : f32 to vector<16x32xf32>
    %9 = arith.mulf %5, %8 : vector<16x32xf32>
    %10 = math.erf %9 : vector<16x32xf32>
    %cst_7 = arith.constant 1.000000e+00 : f32
    %11 = vector.broadcast %cst_7 : f32 to vector<16x32xf32>
    %12 = arith.addf %11, %10 : vector<16x32xf32>
    %13 = arith.mulf %7, %12 : vector<16x32xf32>
    %14 = arith.truncf %13 : vector<16x32xf32> to vector<16x32xbf16>
    %c0_8 = arith.constant 0 : index
    %c0_9 = arith.constant 0 : index
    %15 = vector.load %arg4[%c0_8, %c0_9] : memref<32x32xbf16, #tpu.memory_space<vmem>>, vector<32x32xbf16>
    %cst_10 = arith.constant dense<0.000000e+00> : vector<16x32xf32>
    %16 = tpu.matmul %14, %15, %cst_10 {dimension_numbers = #tpu.dot_dimension_numbers<[1], [0], [0], [1], [0, 0, 1, 1], [], []>} : vector<16x32xbf16>, vector<32x32xbf16>, vector<16x32xf32> -> vector<16x32xf32>
    %c0_11 = arith.constant 0 : index
    %c0_12 = arith.constant 0 : index
    %17 = vector.load %arg5[%c0_11, %c0_12] : memref<1x32xf32, #tpu.memory_space<vmem>>, vector<1x32xf32>
    %18 = vector.broadcast %17 : vector<1x32xf32> to vector<16x32xf32>
    %19 = arith.addf %16, %18 : vector<16x32xf32>
    %c0_13 = arith.constant 0 : index
    %c0_14 = arith.constant 0 : index
    %20 = vector.load %arg6[%c0_13, %c0_14] : memref<16x32xf32, #tpu.memory_space<vmem>>, vector<16x32xf32>
    tpu.vector_store %arg6[%c0_13, %c0_14], %19 {strides = array<i32>} : memref<16x32xf32, #tpu.memory_space<vmem>>, vector<16x32xf32>,
    return
  }
  func.func @transform_0(%arg0: i32) -> (i32, i32) {
    %c0_i32 = arith.constant 0 : i32
    %c0_i32_0 = arith.constant 0 : i32
    return %arg0, %c0_i32 : i32, i32
  }
  func.func @transform_1(%arg0: i32) -> (i32, i32) {
    %c0_i32 = arith.constant 0 : i32
    %c0_i32_0 = arith.constant 0 : i32
    %c0_i32_1 = arith.constant 0 : i32
    return %c0_i32, %c0_i32_0 : i32, i32
  }
  func.func @transform_2(%arg0: i32) -> (i32, i32) {
    %c0_i32 = arith.constant 0 : i32
    %c0_i32_0 = arith.constant 0 : i32
    %c0_i32_1 = arith.constant 0 : i32
    return %c0_i32, %c0_i32_0 : i32, i32
  }
  func.func @transform_3(%arg0: i32) -> (i32, i32) {
    %c0_i32 = arith.constant 0 : i32
    %c0_i32_0 = arith.constant 0 : i32
    %c0_i32_1 = arith.constant 0 : i32
    return %c0_i32, %c0_i32_0 : i32, i32
  }
  func.func @transform_4(%arg0: i32) -> (i32, i32) {
    %c0_i32 = arith.constant 0 : i32
    %c0_i32_0 = arith.constant 0 : i32
    %c0_i32_1 = arith.constant 0 : i32
    return %c0_i32, %c0_i32_0 : i32, i32
  }
  func.func @transform_5(%arg0: i32) -> (i32, i32) {
    %c0_i32 = arith.constant 0 : i32
    %c0_i32_0 = arith.constant 0 : i32
    return %arg0, %c0_i32 : i32, i32
  }
}

</mosaic_0001>

<bundles_post_ra>
// kernel: tpu_custom_call.1
= control target key start
LH: loop header
LB: loop body
LE: loop exit
PB: predicated region body
PF: predicated region fallthrough
CT: control target
= control target key end

     0   :  { %10 = vsyncpa [#allocation3], 0  ;;  %s494_s0 = inlined_call_operand.hbm [shape: bf16[16,32], index: 0, kind: input, shape index: {}]   ;;  %s495_s1 = inlined_call_operand.hbm [shape: bf16[32,32], index: 1, kind: input, shape index: {}]   ;;  %s496_s2 = inlined_call_operand.vmem [shape: f32[1,32], index: 2, kind: input, shape index: {}]   ;;  %s497_s3 = inlined_call_operand.hbm [shape: bf16[32,32], index: 3, kind: input, shape index: {}]   ;;  %s498_s4 = inlined_call_operand.vmem [shape: f32[1,32], index: 4, kind: input, shape index: {}]   ;;  %s499_s5 = inlined_call_operand.hbm [shape: f32[16,32], index: 5, kind: output, shape index: {}]  }
   0x1   :  { %11 = vsyncpa [#allocation6], 0 }
   0x2   :  { %12 = vsyncpa [#allocation4], 0  ;;  %s380_s18 = smov [#allocation5]   ;;  %s381_s20 = smov [#allocation2]  }
   0x3   :  { %s30_s19 = sshll.u32 %s380_s18, 4  ;;  %s18_s21 = sshll.u32 %s381_s20, 4  ;;  %s31_s19 = int_to_ptr.vmem [resolvable:$true] %s30_s19  ;;  %s420_s21 = int_to_ptr.vmem [resolvable:$true] %s18_s21 }
   0x4   :  { %s286_s24 = scalar_lea.hbm %s495_s1, 256 }
   0x5   :  { %p287_p0 = scmp.ne.s32.totalorder %s495_s1, %s286_s24  ;;  %p290_p1 = scmp.lt.u32.totalorder %s286_s24, %s495_s1 }
   0x7   :  { %p292_p2 = pnand %p290_p1, %p287_p0 }
   0x9   :  { %295 = shalt.err (!%p292_p2)
}
   0xa   :  { %s296_s29 = scalar_lea.vmem %s31_s19, 256  ;;  %p301_p4 = scmp.lt.s32.totalorder %s31_s19, %s31_s19 }
   0xb   :  { %p297_p3 = scmp.ne.s32.totalorder %s31_s19, %s296_s29  ;;  %p302_p5 = scmp.lt.s32.totalorder %s296_s29, %s296_s29 }
   0xd   :  { %p303_p6 = por %p302_p5, %p301_p4 }
   0xf   :  { %p304_p7 = pnand %p303_p6, %p297_p3 }
  0x11   :  { %307 = shalt.err (!%p304_p7)
}
  0x12   :  { %s382_s30 = smov 64   ;;  %s383_s6 = smov 4  }
  0x13   :  { %36 = dma.hbm_to_vmem [thread:$0]  %s495_s1, 256, %s31_s19, [#allocation6], %s382_s30, %s382_s30, %s383_s6  }
  0x14   :  { %s308_s11 = scalar_lea.hbm %s494_s0, 128 }
  0x15   :  { %p309_p8 = scmp.ne.s32.totalorder %s494_s0, %s308_s11  ;;  %p312_p9 = scmp.lt.u32.totalorder %s308_s11, %s494_s0 }
  0x17   :  { %p314_p10 = pnand %p312_p9, %p309_p8 }
  0x19   :  { %317 = shalt.err (!%p314_p10)
}
  0x1a   :  { %s318_s16 = scalar_lea.vmem %s420_s21, 128  ;;  %p323_p12 = scmp.lt.s32.totalorder %s420_s21, %s420_s21 }
  0x1b   :  { %p319_p11 = scmp.ne.s32.totalorder %s420_s21, %s318_s16  ;;  %p324_p13 = scmp.lt.s32.totalorder %s318_s16, %s318_s16 }
  0x1d   :  { %p325_p0 = por %p324_p13, %p323_p12 }
  0x1f   :  { %p326_p1 = pnand %p325_p0, %p319_p11 }
  0x21   :  { %329 = shalt.err (!%p326_p1)
}
  0x22   :  { %24 = dma.hbm_to_vmem [thread:$0]  %s494_s0, 128, %s420_s21, [#allocation3], %s382_s30, %s382_s30, %s383_s6  }
  0x23   :  { %s384_s18 = smov [#allocation7]   ;;  %s330_s23 = scalar_lea.hbm %s497_s3, 256 }
  0x24   :  { %s44_s19 = sshll.u32 %s384_s18, 4  ;;  %p331_p2 = scmp.ne.s32.totalorder %s497_s3, %s330_s23  ;;  %s45_s19 = int_to_ptr.vmem [resolvable:$true] %s44_s19 }
  0x25   :  { %p334_p3 = scmp.lt.u32.totalorder %s330_s23, %s497_s3 }
  0x27   :  { %p336_p4 = pnand %p334_p3, %p331_p2 }
  0x29   :  { %339 = shalt.err (!%p336_p4)
}
  0x2a   :  { %s340_s28 = scalar_lea.vmem %s45_s19, 256  ;;  %p345_p6 = scmp.lt.s32.totalorder %s45_s19, %s45_s19 }
  0x2b   :  { %p341_p5 = scmp.ne.s32.totalorder %s45_s19, %s340_s28  ;;  %p346_p7 = scmp.lt.s32.totalorder %s340_s28, %s340_s28 }
  0x2d   :  { %p347_p8 = por %p346_p7, %p345_p6 }
  0x2f   :  { %p348_p9 = pnand %p347_p8, %p341_p5 }
  0x31   :  { %351 = shalt.err (!%p348_p9)
}
  0x32   :  { %50 = dma.hbm_to_vmem [thread:$0]  %s497_s3, 256, %s45_s19, [#allocation6], %s382_s30, %s382_s30, %s383_s6  }
  0x33   :  { %374 = dma.done.wait [#allocation3], 128  }
  0x34   :  { %375 = vsyncadd [#allocation3], 4294967168 }
  0x35   :  { %376 = dma.done.wait [#allocation6], 512  }
  0x36   :  { %377 = vsyncadd [#allocation6], 4294966784  ;;  %v385_v0 = vmov 0.0   ;;  %vm386_vm0 = vmmov 0   ;;  %v277_v1 = vld [vmem:[#allocation5] sm:$0xff]   ;;  %v278_v2 = vld [vmem:[#allocation5 + $0x8] sm:$0xff]  }
  0x37   :  { %251 = vmatprep.subr.bf16.mxu0 %v385_v0  ;;  %255 = vmatprep.mubr.msk.bf16.mxu0 %vm386_vm0, %v385_v0  ;;  %v279_v3 = vld [vmem:[#allocation2] sm:$0xff]   ;;  %vm93_vm1 = vcmask 261120   ;;  %v280_v4 = vld [vmem:[#allocation7] sm:$0xff]   ;;  %s387_s6 = smov [#allocation8]  }
  0x38   :  { %259 = vmatprep.subr.bf16.mxu1 %v385_v0  ;;  %263 = vmatprep.mubr.msk.bf16.mxu1 %vm386_vm0, %v385_v0  ;;  %v281_v5 = vld [vmem:[#allocation7 + $0x8] sm:$0xff]   ;;  %s223_s7 = sshll.u32 %s387_s6, 4  ;;  %s224_s7 = int_to_ptr.vmem [resolvable:$true] %s223_s7 }
  0x39   :  { %252 = vmatpush3.bf16.msra.mxu0 %v277_v1  ;;  %260 = vmatpush3.bf16.msra.mxu1 %v280_v4  ;;  %v236_v6 = vld [vmem:[%s496_s2] ss:$0 sm:$0xff]  ;;  %s352_s8 = scalar_lea.vmem %s224_s7, 256  ;;  %p357_p11 = scmp.lt.s32.totalorder %s224_s7, %s224_s7 }
  0x3a   :  { %253 = vmatprep.subr.bf16.mxu0 %v385_v0  ;;  %261 = vmatprep.subr.bf16.mxu1 %v385_v0  ;;  %v241_v24 = vld [vmem:[%s498_s4] ss:$0 sm:$0xff]  ;;  %p353_p10 = scmp.ne.s32.totalorder %s224_s7, %s352_s8  ;;  %p358_p12 = scmp.lt.s32.totalorder %s352_s8, %s352_s8 }
  0x3c   :  { %p359_p13 = por %p358_p12, %p357_p11 }
  0x3d   :  { %254 = vmatpush3.bf16.msra.mxu0 %v278_v2  ;;  %262 = vmatpush3.bf16.msra.mxu1 %v281_v5 }
  0x3e   :  { %p360_p0 = pnand %p359_p13, %p353_p10 }
  0x40   :  { %256 = vmatmul.mubr.msk.bf16.vlgmr.msra.gmra.mrb[0].mxu0 %vm93_vm1, %v279_v3 }
 0x113   :  { %v131_v7 = vpop.f32.mrb[0].mxu0 }
 0x114   :  { %v132_v8 = vadd.f32 %v236_v6, %v131_v7  ;;  %v257_v9 = vpop.f32.mrb[1].mxu0 }
 0x115   :  { %v134_v10 = vpop.f32.mrb[2].mxu0 }
 0x116   :  { %v140_v11 = vmul.f32 0.70710677, %v132_v8  ;;  %v135_v12 = vadd.f32 %v236_v6, %v134_v10  ;;  %v258_v13 = vpop.f32.mrb[3].mxu0  ;;  %v138_v18 = vmul.f32 0.5, %v132_v8 }
 0x118   :  { %282 = verf.f32 %v140_v11  ;;  %v141_v14 = vmul.f32 0.70710677, %v135_v12  ;;  %v139_v19 = vmul.f32 0.5, %v135_v12 }
 0x11a   :  { %284 = verf.f32 %v141_v14 }
 0x122   :  { %v283_v15 = vpop.eup %282 }
 0x123   :  { %v144_v16 = vadd.f32 1.0, %v283_v15 }
 0x124   :  { %v285_v17 = vpop.eup %284 }
 0x125   :  { %v145_v20 = vadd.f32 1.0, %v285_v17  ;;  %v146_v21 = vmul.f32 %v144_v16, %v138_v18 }
 0x127   :  { %v147_v22 = vmul.f32 %v145_v20, %v139_v19 }
 0x129   :  { %v148_v23 = vpack.c.bf16 %v147_v22, %v146_v21 }
 0x12b   :  { %264 = vmatmul.mubr.msk.bf16.vlgmr.msra.gmra.mrb[0].mxu1 %vm93_vm1, %v148_v23 }
 0x1fe   :  { %v209_v25 = vpop.f32.mrb[0].mxu1 }
 0x1ff   :  { %v210_v26 = vadd.f32 %v241_v24, %v209_v25  ;;  %v265_v27 = vpop.f32.mrb[1].mxu1 }
 0x200   :  { %v212_v28 = vpop.f32.mrb[2].mxu1 }
 0x201   :  { %216 = vst.msk [vmem:[#allocation8] sm:$0xff] %vm93_vm1, %v210_v26  ;;  %v213_v29 = vadd.f32 %v241_v24, %v212_v28  ;;  %v266_v30 = vpop.f32.mrb[3].mxu1 }
 0x203   :  { %217 = vst.msk [vmem:[#allocation8 + $0x8] sm:$0xff] %vm93_vm1, %v213_v29 }
 0x204   :  { %363 = shalt.err (!%p360_p0)
}
 0x205   :  { %s364_s10 = scalar_lea.hbm %s499_s5, 256 }
 0x206   :  { %p365_p1 = scmp.ne.s32.totalorder %s499_s5, %s364_s10  ;;  %p368_p2 = scmp.lt.u32.totalorder %s364_s10, %s499_s5 }
 0x208   :  { %p370_p3 = pnand %p368_p2, %p365_p1 }
 0x20a   :  { %373 = shalt.err (!%p370_p3)
}
 0x20b   :  { %s388_s15 = smov 128   ;;  %s389_s16 = smov 8  }
 0x20c   :  { %229 = dma.vmem_to_hbm [thread:$0]  %s224_s7, 256, %s499_s5, [#allocation4], %s388_s15, %s388_s15, %s389_s16  }
 0x20d   :  { %378 = dma.done.wait [#allocation4], 256  }
 0x20e   :  { %379 = vsyncadd [#allocation4], 4294967040 }
 0x20f   :  { %233 = vsyncpa [#allocation3], 1 }
 0x210   :  { %234 = vsyncpa [#allocation6], 1 }
 0x211   :  { %235 = vsyncpa [#allocation4], 1 }

</bundles_post_ra>
